<compile_context>
chip_gen: v7x
topology: tpu7x:2x2x1
jax: 0.10.0
libtpu: 0.0.40
codegen_flags: <defaults>
</compile_context>

<pallas_src>
import functools

import jax
import jax.numpy as jnp
from jax.experimental import pallas as pl
from jax.experimental.pallas import tpu as pltpu

# ----------------------------- dimensions -----------------------------------
ACTION_DIM = 256
STATE_CODE_DIM = 4
H1, H2, H3, OUT = 64, 128, 256, 1
NEG_SLOPE = 0.01          # F.leaky_relu default
TILE_B = 2048             # per-tile action block = 2 MiB f32 / 1 MiB bf16;
                          # live set well under the 32 MiB VMEM limit below.
VMEM_LIMIT_BYTES = 32 * 1024 * 1024


def _leaky_relu(x):
    return jnp.where(x > 0, x, NEG_SLOPE * x)


def _round_up(n, m):
    return ((n + m - 1) // m) * m


# ------------------------------- kernel -------------------------------------
def discriminator_kernel(a_ref, s_ref,
                         w1a_ref, w1s_ref, b1_ref,
                         w2_ref, b2_ref,
                         w3_ref, b3_ref,
                         w4_ref, b4_ref,
                         out_ref, *, compute_dtype):
    # fc1: the (T, 256) @ (256, 64) part runs on the MXU with aligned K=256; the
    # 4-wide state_code contribution is 4 VPU broadcast-FMAs (no HBM concat, no
    # degenerate K=4 matmul).  Weights arrive already in compute_dtype, so the
    # only in-kernel cast is on the streamed activations (a no-op when the
    # producer already supplies bf16 action).
    a = a_ref[...].astype(compute_dtype)
    h = jnp.dot(a, w1a_ref[...], preferred_element_type=jnp.float32)
    s = s_ref[...]                       # (T, 4),  f32
    w1s = w1s_ref[...]                   # (4, 64), f32
    for k in range(STATE_CODE_DIM):      # static unroll of 4
        h = h + s[:, k:k + 1] * w1s[k:k + 1, :]
    h = _leaky_relu(h + b1_ref[...])     # activation math stays f32 (v5e-safe)

    h = _leaky_relu(
        jnp.dot(h.astype(compute_dtype), w2_ref[...],
                preferred_element_type=jnp.float32) + b2_ref[...])
    h = _leaky_relu(
        jnp.dot(h.astype(compute_dtype), w3_ref[...],
                preferred_element_type=jnp.float32) + b3_ref[...])

    # fc4 has N=1: a full MXU pass for a single output lane is wasteful, so use
    # a VPU multiply + XLU lane reduction (w4 is stored as a (1, 256) f32 row).
    z = jnp.sum(h * w4_ref[...], axis=-1, keepdims=True) + b4_ref[...]
    out_ref[...] = z.astype(out_ref.dtype)


# ------------------------------- wrapper -------------------------------------
def discriminator_forward(action, state_code, params, *,
                          tile_b=TILE_B, compute_dtype=jnp.bfloat16):
    """action: (B, 256) f32 or bf16, state_code: (B, 4) f32 -> (B, 1) f32.

    compute_dtype sets the MXU operand dtype (f32 accumulation everywhere);
    bf16 is recommended on all generations.  If the caller already has `action`
    in bf16 it is consumed directly — do NOT cast it here, that would add a
    standalone HBM round trip.
    """
    assert action.shape[1] == ACTION_DIM
    assert state_code.shape[1] == STATE_CODE_DIM
    w1a, w1s, b1, w2, b2, w3, b3, w4, b4 = params
    B = action.shape[0]

    # Pre-cast the MXU-operand weights once (in a real setup store them in
    # compute_dtype); biases / w1s / w4 stay f32 for the f32 VPU math.
    if compute_dtype != jnp.float32:
        w1a = w1a.astype(compute_dtype)
        w2 = w2.astype(compute_dtype)
        w3 = w3.astype(compute_dtype)

    # Tile choice: as large as possible for HBM-roofline efficiency, but capped
    # so the "parallel" grid keeps >= 4 steps (v7x has 2 TCs; a 1-step grid
    # would idle one of them).  Always a multiple of 8 for sublane alignment.
    eff_tile = min(tile_b, _round_up(pl.cdiv(B, 4), 8))
    grid = (pl.cdiv(B, eff_tile),)       # no host-side pad: the last partial
                                         # block uses padded reads / masked
                                         # writes (rows are independent).

    batch_tiled = lambda i: (i, 0)   # activations stream through the pipeline
    resident = lambda i: (0, 0)      # constant block index -> weights loaded
                                     # once, held in VMEM across all grid steps

    in_specs = [
        pl.BlockSpec((eff_tile, ACTION_DIM), batch_tiled),
        pl.BlockSpec((eff_tile, STATE_CODE_DIM), batch_tiled),
        pl.BlockSpec(w1a.shape, resident),   # (256, 64)  compute_dtype
        pl.BlockSpec(w1s.shape, resident),   # (4, 64)    f32
        pl.BlockSpec(b1.shape, resident),    # (1, 64)    f32
        pl.BlockSpec(w2.shape, resident),    # (64, 128)  compute_dtype
        pl.BlockSpec(b2.shape, resident),    # (1, 128)   f32
        pl.BlockSpec(w3.shape, resident),    # (128, 256) compute_dtype
        pl.BlockSpec(b3.shape, resident),    # (1, 256)   f32
        pl.BlockSpec(w4.shape, resident),    # (1, 256)   f32 row form of fc4
        pl.BlockSpec(b4.shape, resident),    # (1, 1)     f32
    ]

    out = pl.pallas_call(
        functools.partial(discriminator_kernel, compute_dtype=compute_dtype),
        grid=grid,
        in_specs=in_specs,
        out_specs=pl.BlockSpec((eff_tile, OUT), batch_tiled),
        out_shape=jax.ShapeDtypeStruct((B, OUT), jnp.float32),
        compiler_params=pltpu.CompilerParams(
            # batch tiles are fully independent -> shard across both TCs on v7x
            dimension_semantics=("parallel",),
            # lets the 2048-row tile land under v5e's 16 MiB scoped default
            vmem_limit_bytes=VMEM_LIMIT_BYTES),
    )(action, state_code, w1a, w1s, b1, w2, b2, w3, b3, w4, b4)

    return out


# --------------------------- parameter init ----------------------------------
def init_params(key, std=0.1):
    """Synthetic deterministic params.

    Weights are stored as (in, out) (i.e. transposed vs nn.Linear). W1 is
    pre-split into the action part (256,64) and state_code part (4,64); W4 is
    stored as a (1,256) row for the VPU reduction in the kernel.
    """
    def dense(k, din, dout):
        kw, kb = jax.random.split(k)
        w = (std * jax.random.normal(kw, (din, dout))).astype(jnp.float32)
        b = (std * jax.random.normal(kb, (1, dout))).astype(jnp.float32)
        return w, b

    k1, k2, k3, k4 = jax.random.split(key, 4)
    w1, b1 = dense(k1, ACTION_DIM + STATE_CODE_DIM, H1)
    w2, b2 = dense(k2, H1, H2)
    w3, b3 = dense(k3, H2, H3)
    w4, b4 = dense(k4, H3, OUT)
    return (w1[:ACTION_DIM], w1[ACTION_DIM:], b1,
            w2, b2, w3, b3, w4.T, b4)


# --------------------------- pure-JAX reference -------------------------------
def discriminator_ref(action, state_code, params):
    w1a, w1s, b1, w2, b2, w3, b3, w4_row, b4 = params
    x = jnp.concatenate([action.astype(jnp.float32), state_code], axis=1)
    w1 = jnp.concatenate([w1a, w1s], axis=0)
    h = jax.nn.leaky_relu(x @ w1 + b1, NEG_SLOPE)
    h = jax.nn.leaky_relu(h @ w2 + b2, NEG_SLOPE)
    h = jax.nn.leaky_relu(h @ w3 + b3, NEG_SLOPE)
    return h @ w4_row.T + b4


# --------------------------------- main ---------------------------------------
if __name__ == "__main__":
    key = jax.random.PRNGKey(0)
    k_a, k_s, k_p = jax.random.split(key, 3)

    params = init_params(k_p)

    # Small demo batch (B=4 < 8: exercises the padded-read / masked-write path
    # of a single partial block — no host-side pad is performed).
    B = 4
    action = jax.random.normal(k_a, (B, ACTION_DIM), dtype=jnp.float32)
    state_code = jax.random.normal(k_s, (B, STATE_CODE_DIM), dtype=jnp.float32)
    z_ref = discriminator_ref(action, state_code, params)

    # Default path: bf16 MXU operands, f32 accumulation / activations.
    z_bf16 = jax.block_until_ready(discriminator_forward(action, state_code, params))
    assert z_bf16.shape == (B, OUT)
    assert jnp.allclose(z_bf16, z_ref, atol=1e-1, rtol=1e-1), "bf16 mismatch vs reference"

    # Full-f32 path (tighter tolerance).
    z_f32 = jax.block_until_ready(
        discriminator_forward(action, state_code, params, compute_dtype=jnp.float32))
    assert jnp.allclose(z_f32, z_ref, atol=2e-2, rtol=2e-2), "f32 mismatch vs reference"

    # Larger ragged batch: multi-step "parallel" grid (eff_tile=256, 4 steps,
    # last block partial) with no host-side pad copy.
    B2 = 1000
    a2 = jax.random.normal(jax.random.fold_in(key, 7), (B2, ACTION_DIM), jnp.float32)
    s2 = jax.random.normal(jax.random.fold_in(key, 8), (B2, STATE_CODE_DIM), jnp.float32)
    z2 = jax.block_until_ready(discriminator_forward(a2, s2, params))
    z2_ref = discriminator_ref(a2, s2, params)
    assert z2.shape == (B2, OUT)
    assert jnp.allclose(z2, z2_ref, atol=1e-1, rtol=1e-1), "tiled-batch mismatch vs reference"

    # Upstream-supplied bf16 action (halves the dominant HBM stream); consumed
    # directly by the kernel — no wrapper-side cast.
    a2_bf16 = a2.astype(jnp.bfloat16)
    z3 = jax.block_until_ready(discriminator_forward(a2_bf16, s2, params))
    z3_ref = discriminator_ref(a2_bf16, s2, params)
    assert jnp.allclose(z3, z3_ref, atol=1e-1, rtol=1e-1), "bf16-input mismatch vs reference"

    print("KERNEL_OK")
</pallas_src>

<mosaic_0001>
module attributes {stable_mosaic.version = 11 : i64} {
  func.func @discriminator_kernel(%arg0: i32, %arg1: memref<8x256xf32, #tpu.memory_space<vmem>>, %arg2: memref<8x4xf32, #tpu.memory_space<vmem>>, %arg3: memref<256x64xbf16, #tpu.memory_space<vmem>>, %arg4: memref<4x64xf32, #tpu.memory_space<vmem>>, %arg5: memref<1x64xf32, #tpu.memory_space<vmem>>, %arg6: memref<64x128xbf16, #tpu.memory_space<vmem>>, %arg7: memref<1x128xf32, #tpu.memory_space<vmem>>, %arg8: memref<128x256xbf16, #tpu.memory_space<vmem>>, %arg9: memref<1x256xf32, #tpu.memory_space<vmem>>, %arg10: memref<1x256xf32, #tpu.memory_space<vmem>>, %arg11: memref<1x1xf32, #tpu.memory_space<vmem>>, %arg12: memref<8x1xf32, #tpu.memory_space<vmem>>) attributes {dimension_semantics = [#tpu.dimension_semantics<parallel>], iteration_bounds = array<i64: 1>, scalar_prefetch = 0 : i64, scratch_operands = 0 : i64, tpu.core_type = #tpu.core_type<tc>, window_params = [{transform_indices = @transform_0, window_bounds = array<i64: 8, 256>}, {transform_indices = @transform_1, window_bounds = array<i64: 8, 4>}, {pipeline_mode = #tpu.pipeline_mode<synchronous>, transform_indices = @transform_2, window_bounds = array<i64: 256, 64>}, {pipeline_mode = #tpu.pipeline_mode<synchronous>, transform_indices = @transform_3, window_bounds = array<i64: 4, 64>}, {pipeline_mode = #tpu.pipeline_mode<synchronous>, transform_indices = @transform_4, window_bounds = array<i64: 1, 64>}, {pipeline_mode = #tpu.pipeline_mode<synchronous>, transform_indices = @transform_5, window_bounds = array<i64: 64, 128>}, {pipeline_mode = #tpu.pipeline_mode<synchronous>, transform_indices = @transform_6, window_bounds = array<i64: 1, 128>}, {pipeline_mode = #tpu.pipeline_mode<synchronous>, transform_indices = @transform_7, window_bounds = array<i64: 128, 256>}, {pipeline_mode = #tpu.pipeline_mode<synchronous>, transform_indices = @transform_8, window_bounds = array<i64: 1, 256>}, {pipeline_mode = #tpu.pipeline_mode<synchronous>, transform_indices = @transform_9, window_bounds = array<i64: 1, 256>}, {pipeline_mode = #tpu.pipeline_mode<synchronous>, transform_indices = @transform_10, window_bounds = array<i64: 1, 1>}, {transform_indices = @transform_11, window_bounds = array<i64: 8, 1>}]} {
    %c0 = arith.constant 0 : index
    %c0_0 = arith.constant 0 : index
    %0 = vector.load %arg1[%c0, %c0_0] : memref<8x256xf32, #tpu.memory_space<vmem>>, vector<8x256xf32>
    %1 = arith.truncf %0 : vector<8x256xf32> to vector<8x256xbf16>
    %c0_1 = arith.constant 0 : index
    %c0_2 = arith.constant 0 : index
    %2 = vector.load %arg3[%c0_1, %c0_2] : memref<256x64xbf16, #tpu.memory_space<vmem>>, vector<256x64xbf16>
    %cst = arith.constant dense<0.000000e+00> : vector<8x64xf32>
    %3 = tpu.matmul %1, %2, %cst {dimension_numbers = #tpu.dot_dimension_numbers<[1], [0], [0], [1], [0, 0, 1, 1], [], []>} : vector<8x256xbf16>, vector<256x64xbf16>, vector<8x64xf32> -> vector<8x64xf32>
    %c0_3 = arith.constant 0 : index
    %c0_4 = arith.constant 0 : index
    %4 = vector.load %arg2[%c0_3, %c0_4] : memref<8x4xf32, #tpu.memory_space<vmem>>, vector<8x4xf32>
    %c0_5 = arith.constant 0 : index
    %c0_6 = arith.constant 0 : index
    %5 = vector.load %arg4[%c0_5, %c0_6] : memref<4x64xf32, #tpu.memory_space<vmem>>, vector<4x64xf32>
    %6 = vector.extract_strided_slice %4 {offsets = [0, 0], sizes = [8, 1], strides = [1, 1]} : vector<8x4xf32> to vector<8x1xf32>
    %7 = vector.extract_strided_slice %5 {offsets = [0, 0], sizes = [1, 64], strides = [1, 1]} : vector<4x64xf32> to vector<1x64xf32>
    %8 = vector.broadcast %6 : vector<8x1xf32> to vector<8x64xf32>
    %9 = vector.broadcast %7 : vector<1x64xf32> to vector<8x64xf32>
    %10 = arith.mulf %8, %9 : vector<8x64xf32>
    %11 = arith.addf %3, %10 : vector<8x64xf32>
    %12 = vector.extract_strided_slice %4 {offsets = [0, 1], sizes = [8, 1], strides = [1, 1]} : vector<8x4xf32> to vector<8x1xf32>
    %13 = vector.extract_strided_slice %5 {offsets = [1, 0], sizes = [1, 64], strides = [1, 1]} : vector<4x64xf32> to vector<1x64xf32>
    %14 = vector.broadcast %12 : vector<8x1xf32> to vector<8x64xf32>
    %15 = vector.broadcast %13 : vector<1x64xf32> to vector<8x64xf32>
    %16 = arith.mulf %14, %15 : vector<8x64xf32>
    %17 = arith.addf %11, %16 : vector<8x64xf32>
    %18 = vector.extract_strided_slice %4 {offsets = [0, 2], sizes = [8, 1], strides = [1, 1]} : vector<8x4xf32> to vector<8x1xf32>
    %19 = vector.extract_strided_slice %5 {offsets = [2, 0], sizes = [1, 64], strides = [1, 1]} : vector<4x64xf32> to vector<1x64xf32>
    %20 = vector.broadcast %18 : vector<8x1xf32> to vector<8x64xf32>
    %21 = vector.broadcast %19 : vector<1x64xf32> to vector<8x64xf32>
    %22 = arith.mulf %20, %21 : vector<8x64xf32>
    %23 = arith.addf %17, %22 : vector<8x64xf32>
    %24 = vector.extract_strided_slice %4 {offsets = [0, 3], sizes = [8, 1], strides = [1, 1]} : vector<8x4xf32> to vector<8x1xf32>
    %25 = vector.extract_strided_slice %5 {offsets = [3, 0], sizes = [1, 64], strides = [1, 1]} : vector<4x64xf32> to vector<1x64xf32>
    %26 = vector.broadcast %24 : vector<8x1xf32> to vector<8x64xf32>
    %27 = vector.broadcast %25 : vector<1x64xf32> to vector<8x64xf32>
    %28 = arith.mulf %26, %27 : vector<8x64xf32>
    %29 = arith.addf %23, %28 : vector<8x64xf32>
    %c0_7 = arith.constant 0 : index
    %c0_8 = arith.constant 0 : index
    %30 = vector.load %arg5[%c0_7, %c0_8] : memref<1x64xf32, #tpu.memory_space<vmem>>, vector<1x64xf32>
    %31 = vector.broadcast %30 : vector<1x64xf32> to vector<8x64xf32>
    %32 = arith.addf %29, %31 : vector<8x64xf32>
    %cst_9 = arith.constant 0.000000e+00 : f32
    %33 = vector.broadcast %cst_9 : f32 to vector<8x64xf32>
    %34 = arith.cmpf ogt, %32, %33 : vector<8x64xf32>
    %cst_10 = arith.constant 0.00999999977 : f32
    %35 = vector.broadcast %cst_10 : f32 to vector<8x64xf32>
    %36 = arith.mulf %35, %32 : vector<8x64xf32>
    %37 = arith.select %34, %32, %36 : vector<8x64xi1>, vector<8x64xf32>
    %38 = arith.truncf %37 : vector<8x64xf32> to vector<8x64xbf16>
    %c0_11 = arith.constant 0 : index
    %c0_12 = arith.constant 0 : index
    %39 = vector.load %arg6[%c0_11, %c0_12] : memref<64x128xbf16, #tpu.memory_space<vmem>>, vector<64x128xbf16>
    %cst_13 = arith.constant dense<0.000000e+00> : vector<8x128xf32>
    %40 = tpu.matmul %38, %39, %cst_13 {dimension_numbers = #tpu.dot_dimension_numbers<[1], [0], [0], [1], [0, 0, 1, 1], [], []>} : vector<8x64xbf16>, vector<64x128xbf16>, vector<8x128xf32> -> vector<8x128xf32>
    %c0_14 = arith.constant 0 : index
    %c0_15 = arith.constant 0 : index
    %41 = vector.load %arg7[%c0_14, %c0_15] : memref<1x128xf32, #tpu.memory_space<vmem>>, vector<1x128xf32>
    %42 = vector.broadcast %41 : vector<1x128xf32> to vector<8x128xf32>
    %43 = arith.addf %40, %42 : vector<8x128xf32>
    %cst_16 = arith.constant 0.000000e+00 : f32
    %44 = vector.broadcast %cst_16 : f32 to vector<8x128xf32>
    %45 = arith.cmpf ogt, %43, %44 : vector<8x128xf32>
    %cst_17 = arith.constant 0.00999999977 : f32
    %46 = vector.broadcast %cst_17 : f32 to vector<8x128xf32>
    %47 = arith.mulf %46, %43 : vector<8x128xf32>
    %48 = arith.select %45, %43, %47 : vector<8x128xi1>, vector<8x128xf32>
    %49 = arith.truncf %48 : vector<8x128xf32> to vector<8x128xbf16>
    %c0_18 = arith.constant 0 : index
    %c0_19 = arith.constant 0 : index
    %50 = vector.load %arg8[%c0_18, %c0_19] : memref<128x256xbf16, #tpu.memory_space<vmem>>, vector<128x256xbf16>
    %cst_20 = arith.constant dense<0.000000e+00> : vector<8x256xf32>
    %51 = tpu.matmul %49, %50, %cst_20 {dimension_numbers = #tpu.dot_dimension_numbers<[1], [0], [0], [1], [0, 0, 1, 1], [], []>} : vector<8x128xbf16>, vector<128x256xbf16>, vector<8x256xf32> -> vector<8x256xf32>
    %c0_21 = arith.constant 0 : index
    %c0_22 = arith.constant 0 : index
    %52 = vector.load %arg9[%c0_21, %c0_22] : memref<1x256xf32, #tpu.memory_space<vmem>>, vector<1x256xf32>
    %53 = vector.broadcast %52 : vector<1x256xf32> to vector<8x256xf32>
    %54 = arith.addf %51, %53 : vector<8x256xf32>
    %cst_23 = arith.constant 0.000000e+00 : f32
    %55 = vector.broadcast %cst_23 : f32 to vector<8x256xf32>
    %56 = arith.cmpf ogt, %54, %55 : vector<8x256xf32>
    %cst_24 = arith.constant 0.00999999977 : f32
    %57 = vector.broadcast %cst_24 : f32 to vector<8x256xf32>
    %58 = arith.mulf %57, %54 : vector<8x256xf32>
    %59 = arith.select %56, %54, %58 : vector<8x256xi1>, vector<8x256xf32>
    %c0_25 = arith.constant 0 : index
    %c0_26 = arith.constant 0 : index
    %60 = vector.load %arg10[%c0_25, %c0_26] : memref<1x256xf32, #tpu.memory_space<vmem>>, vector<1x256xf32>
    %61 = vector.broadcast %60 : vector<1x256xf32> to vector<8x256xf32>
    %62 = arith.mulf %59, %61 : vector<8x256xf32>
    %cst_27 = arith.constant dense<0.000000e+00> : vector<8xf32>
    %63 = vector.multi_reduction <add>, %62, %cst_27 [1] : vector<8x256xf32> to vector<8xf32>
    %64 = vector.shape_cast %63 : vector<8xf32> to vector<8x1xf32>
    %c0_28 = arith.constant 0 : index
    %c0_29 = arith.constant 0 : index
    %65 = vector.load %arg11[%c0_28, %c0_29] : memref<1x1xf32, #tpu.memory_space<vmem>>, vector<1x1xf32>
    %66 = vector.broadcast %65 : vector<1x1xf32> to vector<8x1xf32>
    %67 = arith.addf %64, %66 : vector<8x1xf32>
    %c0_30 = arith.constant 0 : index
    %c0_31 = arith.constant 0 : index
    %68 = vector.load %arg12[%c0_30, %c0_31] : memref<8x1xf32, #tpu.memory_space<vmem>>, vector<8x1xf32>
    tpu.vector_store %arg12[%c0_30, %c0_31], %67 {strides = array<i32>} : memref<8x1xf32, #tpu.memory_space<vmem>>, vector<8x1xf32>,
    return
  }
  func.func @transform_0(%arg0: i32) -> (i32, i32) {
    %c0_i32 = arith.constant 0 : i32
    %c0_i32_0 = arith.constant 0 : i32
    return %arg0, %c0_i32 : i32, i32
  }
  func.func @transform_1(%arg0: i32) -> (i32, i32) {
    %c0_i32 = arith.constant 0 : i32
    %c0_i32_0 = arith.constant 0 : i32
    return %arg0, %c0_i32 : i32, i32
  }
  func.func @transform_2(%arg0: i32) -> (i32, i32) {
    %c0_i32 = arith.constant 0 : i32
    %c0_i32_0 = arith.constant 0 : i32
    %c0_i32_1 = arith.constant 0 : i32
    return %c0_i32, %c0_i32_0 : i32, i32
  }
  func.func @transform_3(%arg0: i32) -> (i32, i32) {
    %c0_i32 = arith.constant 0 : i32
    %c0_i32_0 = arith.constant 0 : i32
    %c0_i32_1 = arith.constant 0 : i32
    return %c0_i32, %c0_i32_0 : i32, i32
  }
  func.func @transform_4(%arg0: i32) -> (i32, i32) {
    %c0_i32 = arith.constant 0 : i32
    %c0_i32_0 = arith.constant 0 : i32
    %c0_i32_1 = arith.constant 0 : i32
    return %c0_i32, %c0_i32_0 : i32, i32
  }
  func.func @transform_5(%arg0: i32) -> (i32, i32) {
    %c0_i32 = arith.constant 0 : i32
    %c0_i32_0 = arith.constant 0 : i32
    %c0_i32_1 = arith.constant 0 : i32
    return %c0_i32, %c0_i32_0 : i32, i32
  }
  func.func @transform_6(%arg0: i32) -> (i32, i32) {
    %c0_i32 = arith.constant 0 : i32
    %c0_i32_0 = arith.constant 0 : i32
    %c0_i32_1 = arith.constant 0 : i32
    return %c0_i32, %c0_i32_0 : i32, i32
  }
  func.func @transform_7(%arg0: i32) -> (i32, i32) {
    %c0_i32 = arith.constant 0 : i32
    %c0_i32_0 = arith.constant 0 : i32
    %c0_i32_1 = arith.constant 0 : i32
    return %c0_i32, %c0_i32_0 : i32, i32
  }
  func.func @transform_8(%arg0: i32) -> (i32, i32) {
    %c0_i32 = arith.constant 0 : i32
    %c0_i32_0 = arith.constant 0 : i32
    %c0_i32_1 = arith.constant 0 : i32
    return %c0_i32, %c0_i32_0 : i32, i32
  }
  func.func @transform_9(%arg0: i32) -> (i32, i32) {
    %c0_i32 = arith.constant 0 : i32
    %c0_i32_0 = arith.constant 0 : i32
    %c0_i32_1 = arith.constant 0 : i32
    return %c0_i32, %c0_i32_0 : i32, i32
  }
  func.func @transform_10(%arg0: i32) -> (i32, i32) {
    %c0_i32 = arith.constant 0 : i32
    %c0_i32_0 = arith.constant 0 : i32
    %c0_i32_1 = arith.constant 0 : i32
    return %c0_i32, %c0_i32_0 : i32, i32
  }
  func.func @transform_11(%arg0: i32) -> (i32, i32) {
    %c0_i32 = arith.constant 0 : i32
    %c0_i32_0 = arith.constant 0 : i32
    return %arg0, %c0_i32 : i32, i32
  }
}

</mosaic_0001>

<bundles_post_ra>
// kernel: tpu_custom_call.1
= control target key start
LH: loop header
LB: loop body
LE: loop exit
PB: predicated region body
PF: predicated region fallthrough
CT: control target
= control target key end

     0   :  { %s934_s0 = inlined_call_operand.vmem [shape: f32[4,256], index: 0, kind: input, shape index: {}]   ;;  %s935_s1 = inlined_call_operand.vmem [shape: f32[4,4], index: 1, kind: input, shape index: {}]   ;;  %s936_s2 = inlined_call_operand.vmem [shape: bf16[256,64], index: 2, kind: input, shape index: {}]   ;;  %s937_s3 = inlined_call_operand.vmem [shape: f32[4,64], index: 3, kind: input, shape index: {}]   ;;  %s938_s4 = inlined_call_operand.vmem [shape: f32[1,64], index: 4, kind: input, shape index: {}]   ;;  %s939_s5 = inlined_call_operand.vmem [shape: bf16[64,128], index: 5, kind: input, shape index: {}]   ;;  %s940_s6 = inlined_call_operand.vmem [shape: f32[1,128], index: 6, kind: input, shape index: {}]   ;;  %s941_s7 = inlined_call_operand.vmem [shape: bf16[128,256], index: 7, kind: input, shape index: {}]   ;;  %s942_s8 = inlined_call_operand.vmem [shape: f32[1,256], index: 8, kind: input, shape index: {}]   ;;  %s943_s9 = inlined_call_operand.vmem [shape: f32[1,256], index: 9, kind: input, shape index: {}]   ;;  %s944_s10 = inlined_call_operand.<no memory space> [shape: f32[1,1], index: 10, kind: input, shape index: {}]   ;;  %s945_s11 = inlined_call_operand.vmem [shape: f32[4,1], index: 11, kind: output, shape index: {}]  }
   0x1   :  { %v16_v0 = vstv %s944_s10 }
   0x2   :  { %17 = vst [vmem:[#allocation2] sm:$0x1] %v16_v0 }
   0x3   :  { %v671_v1 = vld [vmem:[%s936_s2 + $0x40] sm:$0xff]   ;;  %v718_v3 = vmov 0   ;;  %v673_v4 = vld [vmem:[%s936_s2 + $0x48] sm:$0xff]   ;;  %v719_v5 = vmov 2   ;;  %v675_v7 = vld [vmem:[%s936_s2 + $0x50] sm:$0xff]   ;;  %v720_v21 = vmov 1   ;;  %v90_v32 = vlaneseq }
   0x4   :  { %v672_v2 = vld [vmem:[%s936_s2] sm:$0xff]   ;;  %666 = vset.pattern.permute.xlu0 %v718_v3  ;;  %621 = vmatprep.subr.bf16.mxu0 %v671_v1  ;;  %v674_v6 = vld [vmem:[%s936_s2 + $0x8] sm:$0xff]   ;;  %v676_v8 = vld [vmem:[%s936_s2 + $0x10] sm:$0xff]   ;;  %v721_v22 = vmov 3   ;;  %v722_v27 = vmov 0.0   ;;  %vm723_vm0 = vmmov 0  }
   0x5   :  { %668 = vset.pattern.permute.xlu1 %v719_v5  ;;  %622 = vmatpush3.bf16.msra.mxu0 %v672_v2  ;;  %v677_v9 = vld [vmem:[%s936_s2 + $0x58] sm:$0xff]   ;;  %v679_v11 = vld [vmem:[%s936_s2 + $0x60] sm:$0xff]   ;;  %v681_v13 = vld [vmem:[%s936_s2 + $0x68] sm:$0xff]   ;;  %v91_v33 = vshrl.u32 %v90_v32, 7  ;;  %vm312_vm2 = vcmask 523264   ;;  %vm540_vm6 = vcmask 7168  }
   0x6   :  { %623 = vmatprep.subr.bf16.mxu0 %v673_v4  ;;  %v678_v10 = vld [vmem:[%s936_s2 + $0x18] sm:$0xff]   ;;  %v680_v12 = vld [vmem:[%s936_s2 + $0x20] sm:$0xff]   ;;  %v682_v14 = vld [vmem:[%s936_s2 + $0x28] sm:$0xff]   ;;  %648 = vmatprep.subr.bf16.mxu1 %v722_v27 }
   0x7   :  { %v689_v15 = vld [vmem:[%s934_s0 + $0x4] ss:$8 sps:$4 sm:$0xff]   ;;  %v683_v17 = vld [vmem:[%s936_s2 + $0x70] sm:$0xff]   ;;  %v685_v20 = vld [vmem:[%s936_s2 + $0x78] sm:$0xff]   ;;  %656 = vmatprep.mubr.msk.bf16.mxu1 %vm723_vm0, %v722_v27  ;;  %v860_v35 = vsub.s32 0, %v91_v33  ;;  %v862_v36 = vsub.s32 1, %v91_v33 }
   0x8   :  { %v83_v16 = vld [vmem:[%s935_s1] sm:$0xff]  ;;  %v50_v18 = vpack.c.bf16 %v689_v15, %v689_v15  ;;  %v684_v19 = vld [vmem:[%s936_s2 + $0x30] sm:$0xff]   ;;  %v686_v24 = vld [vmem:[%s936_s2 + $0x38] sm:$0xff]   ;;  %v247_v38 = vsub.s32 2, %v91_v33  ;;  %v257_v42 = vsub.s32 3, %v91_v33 }
   0x9   :  { %624 = vmatpush3.bf16.msra.mxu0 %v674_v6  ;;  %87 = vperm.xlu0 %666, %v83_v16   ;;  %v687_v23 = vld [vmem:[%s934_s0] ss:$8 sps:$4 sm:$0xff]   ;;  %v692_v29 = vld [vmem:[%s939_s5 + $0x10] sm:$0xff]   ;;  %v693_v30 = vld [vmem:[%s939_s5 + $0x18] sm:$0xff]  }
   0xa   :  { %625 = vmatprep.subr.bf16.mxu0 %v675_v7  ;;  %242 = vperm.xlu1 %668, %v83_v16   ;;  %v49_v25 = vpack.c.bf16 %v687_v23, %v687_v23  ;;  %v690_v26 = vld [vmem:[%s939_s5] sm:$0xff]   ;;  %v691_v28 = vld [vmem:[%s939_s5 + $0x8] sm:$0xff]   ;;  %v699_v2 = vld [vmem:[%s941_s7 + $0x14] ss:$8 sps:$4 sm:$0xff]  }
   0xb   :  { %223 = vmatprep.mubr.bf16.mxu0 %v50_v18  ;;  %649 = vmatpush3.bf16.msra.mxu1 %v690_v26  ;;  %v696_v31 = vld [vmem:[%s941_s7 + $0x4] ss:$8 sps:$4 sm:$0xff]   ;;  %v84_v37 = vld [vmem:[%s937_s3] sm:$0xf]  ;;  %v697_v4 = vld [vmem:[%s941_s7 + $0x10] ss:$8 sps:$4 sm:$0xff]  }
   0xc   :  { %650 = vmatprep.subr.bf16.mxu1 %v722_v27  ;;  %v93_v40 = vrot.slane %v84_v37, %v860_v35  ;;  %v238_v41 = vrot.slane %v84_v37, %v862_v36  ;;  %v248_v46 = vrot.slane %v84_v37, %v247_v38  ;;  %v258_v51 = vrot.slane %v84_v37, %v257_v42  ;;  %v597_v59 = vld [vmem:[%s938_s4] ss:$0 sm:$0xff]  ;;  %v702_v5 = vld [vmem:[%s941_s7 + $0x24] ss:$8 sps:$4 sm:$0xff]   ;;  %v705_v7 = vld [vmem:[%s941_s7 + $0x34] ss:$8 sps:$4 sm:$0xff]  }
   0xd   :  { %626 = vmatpush3.bf16.msra.mxu0 %v676_v8  ;;  %667 = vset.pattern.permute.xlu0 %v720_v21  ;;  %v694_v0 = vld [vmem:[%s941_s7] ss:$8 sps:$4 sm:$0xff]   ;;  %v708_v8 = vld [vmem:[%s941_s7 + $0x44] ss:$8 sps:$4 sm:$0xff]   ;;  %v715_v15 = vld [vmem:[%s941_s7 + $0x70] ss:$8 sps:$4 sm:$0xff]  }
   0xe   :  { %627 = vmatprep.subr.bf16.mxu0 %v677_v9  ;;  %669 = vset.pattern.permute.xlu1 %v721_v22  ;;  %v700_v6 = vld [vmem:[%s941_s7 + $0x20] ss:$8 sps:$4 sm:$0xff]  }
   0xf   :  { %232 = vperm.xlu0 %667, %v83_v16   ;;  %252 = vperm.xlu1 %669, %v83_v16   ;;  %v706_v9 = vld [vmem:[%s941_s7 + $0x40] ss:$8 sps:$4 sm:$0xff]  }
  0x10   :  { %651 = vmatpush3.bf16.msra.mxu1 %v691_v28  ;;  %v598_v16 = vld [vmem:[%s940_s6] ss:$0 sm:$0xff] }
  0x11   :  { %628 = vmatpush3.bf16.msra.mxu0 %v678_v10  ;;  %652 = vmatprep.subr.bf16.mxu1 %v722_v27  ;;  %v711_v10 = vld [vmem:[%s941_s7 + $0x54] ss:$8 sps:$4 sm:$0xff]   ;;  %v515_v28 = vld [vmem:[%s943_s9] sm:$0x3] }
  0x12   :  { %629 = vmatprep.subr.bf16.mxu0 %v679_v11  ;;  %v709_v11 = vld [vmem:[%s941_s7 + $0x50] ss:$8 sps:$4 sm:$0xff]  }
  0x13   :  { %670 = vset.pattern.permute.xlu0 %v721_v22 }
  0x14   :  { %653 = vmatpush3.bf16.msra.mxu1 %v692_v29 }
  0x15   :  { %630 = vmatpush3.bf16.msra.mxu0 %v680_v12  ;;  %654 = vmatprep.subr.bf16.mxu1 %v722_v27  ;;  %v714_v12 = vld [vmem:[%s941_s7 + $0x64] ss:$8 sps:$4 sm:$0xff]  }
  0x16   :  { %631 = vmatprep.subr.bf16.mxu0 %v681_v13  ;;  %v712_v13 = vld [vmem:[%s941_s7 + $0x60] ss:$8 sps:$4 sm:$0xff]  }
  0x18   :  { %655 = vmatpush3.bf16.msra.mxu1 %v693_v30 }
  0x19   :  { %632 = vmatpush3.bf16.msra.mxu0 %v682_v14  ;;  %468 = vmatprep.subr.bf16.mxu1 %v696_v31  ;;  %v717_v14 = vld [vmem:[%s941_s7 + $0x74] ss:$8 sps:$4 sm:$0xff]  }
  0x1a   :  { %633 = vmatprep.subr.bf16.mxu0 %v683_v17 }
  0x1d   :  { %634 = vmatpush3.bf16.msra.mxu0 %v684_v19 }
  0x1e   :  { %635 = vmatprep.subr.bf16.mxu0 %v685_v20 }
  0x21   :  { %636 = vmatpush3.bf16.msra.mxu0 %v686_v24 }
  0x24   :  { %224 = vmatmul.mubr.bf16.vlgmr.msra.gmra.mrb[0].mxu0 %v49_v25  ;;  %v376_v25 = vld [vmem:[%s942_s8] sm:$0x3] }
  0x25   :  { %v381_v26 = vrot.slane %v376_v25, %v860_v35  ;;  %v385_v27 = vrot.slane %v376_v25, %v862_v36 }
  0x88   :  { %v88_v34 = vpop.permute.xlu0 %87 }
  0x89   :  { %v243_v39 = vpop.permute.xlu1 %242  ;;  %v94_v47 = vmul.f32 %v93_v40, %v88_v34  ;;  %v520_v34 = vrot.slane %v515_v28, %v860_v35 }
  0x8a   :  { %v249_v55 = vmul.f32 %v248_v46, %v243_v39  ;;  %v524_v39 = vrot.slane %v515_v28, %v862_v36  ;;  %v620_v46 = vld [vmem:[#allocation2] ss:$0 sm:$0xff] }
  0x8e   :  { %v233_v43 = vpop.permute.xlu0 %232  ;;  %v253_v53 = vpop.permute.xlu1 %252 }
  0x8f   :  { %v239_v50 = vmul.f32 %v238_v41, %v233_v43  ;;  %v259_v57 = vmul.f32 %v258_v51, %v253_v53 }
  0xf7   :  { %v637_v44 = vpop.f32.mrb[0].mxu0 }
  0xf8   :  { %v638_v45 = vpop.f32.mrb[1].mxu0 }
  0xf9   :  { %v639_v48 = vadd.f32 %v638_v45, %v637_v44  ;;  %v640_v49 = vpop.f32.mrb[2].mxu0 }
  0xfa   :  { %v641_v52 = vpop.f32.mrb[3].mxu0 }
  0xfb   :  { %v226_v54 = vadd.f32 %v639_v48, %v94_v47 }
  0xfd   :  { %v240_v56 = vadd.f32 %v239_v50, %v226_v54 }
  0xff   :  { %v250_v58 = vadd.f32 %v249_v55, %v240_v56 }
 0x101   :  { %v260_v60 = vadd.f32 %v259_v57, %v250_v58 }
 0x103   :  { %v268_v61 = vadd.f32 %v597_v59, %v260_v60 }
 0x105   :  { %vm269_vm1 = vcmp.gt.f32.partialorder %v268_v61, 0.0  ;;  %v270_v62 = vmul.f32 0.01, %v268_v61 }
 0x107   :  { %v271_v63 = vsel %vm269_vm1, %v268_v61, %v270_v62 }
 0x108   :  { %v272_v1 = vpack.c.bf16 %v271_v63, %v271_v63 }
 0x10a   :  { %657 = vmatmul.mubr.msk.bf16.vlgmr.msra.gmra.mrb[0].mxu1 %vm312_vm2, %v272_v1 }
 0x10b   :  { %469 = vmatpush1.bf16.msra.mxu1 %v694_v0  ;;  %500 = vmatprep.mubr.bf16.mxu1 %v718_v3  ;;  %v703_v3 = vld [vmem:[%s941_s7 + $0x30] ss:$8 sps:$4 sm:$0xff]  }
 0x10c   :  { %470 = vmatprep.subr.bf16.mxu1 %v699_v2 }
 0x10f   :  { %471 = vmatpush1.bf16.msra.mxu1 %v697_v4 }
 0x110   :  { %472 = vmatprep.subr.bf16.mxu1 %v702_v5 }
 0x113   :  { %473 = vmatpush1.bf16.msra.mxu1 %v700_v6 }
 0x114   :  { %474 = vmatprep.subr.bf16.mxu1 %v705_v7 }
 0x117   :  { %475 = vmatpush1.bf16.msra.mxu1 %v703_v3 }
 0x118   :  { %476 = vmatprep.subr.bf16.mxu1 %v708_v8 }
 0x11b   :  { %477 = vmatpush1.bf16.msra.mxu1 %v706_v9 }
 0x11c   :  { %478 = vmatprep.subr.bf16.mxu1 %v711_v10 }
 0x11f   :  { %479 = vmatpush1.bf16.msra.mxu1 %v709_v11 }
 0x120   :  { %480 = vmatprep.subr.bf16.mxu1 %v714_v12 }
 0x123   :  { %481 = vmatpush1.bf16.msra.mxu1 %v712_v13 }
 0x124   :  { %482 = vmatprep.subr.bf16.mxu1 %v717_v14 }
 0x127   :  { %483 = vmatpush1.bf16.msra.mxu1 %v715_v15 }
 0x1dd   :  { %v350_v17 = vpop.f32.mrb[0].mxu1 }
 0x1de   :  { %v351_v18 = vadd.f32 %v598_v16, %v350_v17  ;;  %v658_v19 = vpop.f32.mrb[1].mxu1 }
 0x1df   :  { %v353_v20 = vpop.f32.mrb[2].mxu1 }
 0x1e0   :  { %vm356_vm3 = vcmp.gt.f32.partialorder %v351_v18, 0.0  ;;  %v357_v21 = vmul.f32 0.01, %v351_v18  ;;  %v659_v22 = vpop.f32.mrb[3].mxu1 }
 0x1e2   :  { %v358_v23 = vsel %vm356_vm3, %v351_v18, %v357_v21 }
 0x1e3   :  { %v359_v24 = vpack.c.bf16 %v358_v23, %v358_v23 }
 0x1e5   :  { %501 = vmatmul.mubr.bf16.vlgmr.msra.gmra.mrb[4].mxu1 %v359_v24 }
 0x2b8   :  { %v502_v29 = vpop.f32.mrb[4].mxu1 }
 0x2b9   :  { %v503_v30 = vadd.f32 %v502_v29, %v381_v26  ;;  %v504_v31 = vpop.f32.mrb[5].mxu1 }
 0x2ba   :  { %v505_v32 = vadd.f32 %v504_v31, %v385_v27  ;;  %v506_v33 = vpop.f32.mrb[6].mxu1 }
 0x2bb   :  { %vm509_vm4 = vcmp.gt.f32.partialorder %v503_v30, 0.0  ;;  %v511_v37 = vmul.f32 0.01, %v503_v30  ;;  %v507_v38 = vpop.f32.mrb[7].mxu1 }
 0x2bc   :  { %vm510_vm5 = vcmp.gt.f32.partialorder %v505_v32, 0.0  ;;  %v512_v40 = vmul.f32 0.01, %v505_v32 }
 0x2bd   :  { %v513_v41 = vsel %vm509_vm4, %v503_v30, %v511_v37 }
 0x2be   :  { %v514_v42 = vsel %vm510_vm5, %v505_v32, %v512_v40  ;;  %v527_v43 = vmul.f32 %v520_v34, %v513_v41 }
 0x2bf   :  { %v528_v44 = vmul.f32 %v524_v39, %v514_v42 }
 0x2c1   :  { %v529_v45 = vadd.f32 %v528_v44, %v527_v43 }
 0x2c3   :  { %530 = vadd.xlane.f32.xlu1 %v529_v45 }
 0x350   :  { %v531_v47 = vpop.xlane.xlu1 %530 }
 0x351   :  { %v539_v48 = vadd.f32 %v620_v46, %v531_v47 }
 0x353   :  { %541 = vst.msk [vmem:[#allocation3] sm:$0xff] %vm540_vm6, %v539_v48 }
 0x35a   :  { %v559_v49 = vld [vmem:[#allocation3] sm:$0xf] }
 0x35b   :  { %560 = vst [vmem:[%s945_s11] sm:$0xf] %v559_v49 }

</bundles_post_ra>
